<compile_context>
chip_gen: v7x
topology: tpu7x:2x2x1
jax: 0.10.0
libtpu: 0.0.40
codegen_flags: <defaults>
</compile_context>

<pallas_src>
import functools

import jax
import jax.numpy as jnp
from jax import lax
from jax.experimental import pallas as pl
from jax.experimental.pallas import tpu as pltpu


def _round_up(x, m):
    return (x + m - 1) // m * m


def _cdiv(a, b):
    return (a + b - 1) // b


# --------------------------------------------------------------------------
# pltpu.roll rotation-direction probe (run once, eagerly, tiny kernel).  The
# main kernel only needs "rotate by a static amount along lanes"; the sign
# convention is verified empirically so the kernel is correct either way.
# --------------------------------------------------------------------------
@functools.cache
def _roll_is_jnp_convention():
    def probe(x_ref, o_ref):
        o_ref[...] = pltpu.roll(x_ref[...], 1, axis=1)

    x = jnp.tile(jnp.arange(128, dtype=jnp.float32)[None, :], (8, 1))
    out = pl.pallas_call(
        probe, out_shape=jax.ShapeDtypeStruct((8, 128), jnp.float32))(x)
    # jnp.roll convention: roll(x, +1) moves elements toward higher indices,
    # so column 0 receives the last element (127).
    return bool(out[0, 0] == 127.0)


def _roll_shift(amount, n, jnp_conv):
    """Static shift for pltpu.roll so that out[:, i] = in[:, (i - amount) % n]."""
    amount = amount % n
    return amount if jnp_conv else (-amount) % n


# --------------------------------------------------------------------------
# Kernel: one grid step == (batch element, output time tile).
# --------------------------------------------------------------------------
def _jasper_kernel(l1_ref, lr_ref,                 # SMEM (B,) int32 mask lengths
                   x_ref,                          # (1, Cin, Tp) activation slab
                   wdw_ref,                        # (Cin, K)   depthwise weight
                   wf_ref,                         # (Cout, Cin or 2*Cin) fused 1x1 weight
                   bias_ref,                       # (Cout, 1)  fused BN bias
                   out_ref,                        # (1, Cout, TT)
                   *, K, S, D, P, TT, TWIN, mm_dtype, has_res, roll_jnp):
    b = pl.program_id(0)
    t = pl.program_id(1)
    L1 = l1_ref[b]                                 # length after depthwise (== after 1x1)
    Lr = lr_ref[b]                                 # length used by the residual 1x1

    Cin = x_ref.shape[1]
    o0 = t * TT                                    # first output-time index of this tile
    s0 = o0 * S - P                                # first original-time index of the window
    c0 = jnp.maximum(s0, 0)                        # clamped, in-bounds load start

    # ---- depthwise-conv input window: one dynamic load per tile (incl. halo) ----
    w_raw = x_ref[0, :, pl.ds(c0, TWIN)]                          # (Cin, TWIN) f32
    if P > 0:
        # Only the first time tile starts before index 0; realign it with one roll.
        w_fix = pltpu.roll(w_raw, _roll_shift(P, TWIN, roll_jnp), axis=1)
        w_al = jnp.where(t == 0, w_fix, w_raw)
    else:
        w_al = w_raw
    g = s0 + lax.broadcasted_iota(jnp.int32, (Cin, TWIN), 1)      # original time index
    w_m = jnp.where((g >= 0) & (g < L1), w_al, 0.0)               # MaskedConv1d(L1) + pad

    # ---- depthwise taps: XLU lane rolls for stride 1, strided slices otherwise --
    wdw = wdw_ref[...]                                            # (Cin, K)
    if S == 1:
        acc = w_m * wdw[:, 0:1]
        for k in range(1, K):
            shifted = pltpu.roll(w_m, _roll_shift(-k * D, TWIN, roll_jnp), axis=1)
            acc = acc + wdw[:, k:k + 1] * shifted
        dw = acc[:, :TT]                                          # (Cin, TT) f32
    else:
        # TODO(synk): deinterleave the S stride phases once instead of K strided slices.
        acc = wdw[:, 0:1] * lax.slice(w_m, (0, 0), (Cin, (TT - 1) * S + 1), (1, S))
        for k in range(1, K):
            st = k * D
            acc = acc + wdw[:, k:k + 1] * lax.slice(
                w_m, (0, st), (Cin, st + (TT - 1) * S + 1), (1, S))
        dw = acc

    # ---- mask of the following 1x1 MaskedConv1d (its new length == L1) ----------
    oi = o0 + lax.broadcasted_iota(jnp.int32, (Cin, TT), 1)       # output-time index
    dw_m = jnp.where(oi < L1, dw, 0.0)

    if has_res:
        # ---- residual branch: masked (Lr) stride-S 1x1 conv input ---------------
        if S == 1:
            r_raw = x_ref[0, :, pl.ds(pl.multiple_of(o0, 128), TT)]   # aligned load
        else:
            r_raw = lax.slice(w_al, (0, P), (Cin, P + (TT - 1) * S + 1), (1, S))
        r_m = jnp.where(oi * S < Lr, r_raw, 0.0)
        a = jnp.concatenate([dw_m, r_m], axis=0).astype(mm_dtype)     # (2*Cin, TT)
    else:
        a = dw_m.astype(mm_dtype)                                     # (Cin, TT)

    # ---- fused 1x1 conv(s) + folded BatchNorm on the MXU, then ReLU -------------
    y = jnp.dot(wf_ref[...], a, preferred_element_type=jnp.float32)   # (Cout, TT) f32
    y = y + bias_ref[...]
    out_ref[0] = jnp.maximum(y, 0.0)          # ReLU; Dropout (eval) == identity


# --------------------------------------------------------------------------
# Wrapper: length arithmetic, alignment padding, BN folding + pallas_call.
# --------------------------------------------------------------------------
def jasper_block(x, length, params, *, kernel_size, stride=1, padding=0,
                 dilation=1, time_tile=128, matmul_dtype=jnp.bfloat16):
    """Fused JasperBlock forward (eval-mode BatchNorm / Dropout).

    params:
      w_dw    : (Cin, K)    depthwise MaskedConv1d weight (groups == Cin)
      w_pw    : (Cout, Cin) 1x1 MaskedConv1d weight
      bn_main : (gamma, beta, running_mean, running_var)
      w_res, bn_res : residual 1x1 conv + BN (module's residual=True) or None.
    """
    B, Cin, T = x.shape
    K, S, P, D = kernel_size, stride, padding, dilation
    Cout = params["w_pw"].shape[0]
    has_res = params.get("w_res") is not None
    assert time_tile % 128 == 0
    TT = time_tile

    T_out = (T + 2 * P - D * (K - 1) - 1) // S + 1
    if has_res:
        assert T_out == (T - 1) // S + 1, "residual add needs matching output length"
    nT = _cdiv(T_out, TT)

    # Per-tile input window (with conv halo), rounded up to a lane multiple.
    TWIN = _round_up((TT - 1) * S + max((K - 1) * D, P) + 1, 128)
    # Right-pad (alignment + halo of the last tile) only -- no (P, P) HBM pre-pad.
    need = max(T, TWIN, (nT - 1) * TT * S - P + TWIN, (nT * TT - 1) * S + 1)
    Tp = _round_up(need, 128)
    if Tp != T:
        x = jnp.pad(x, ((0, 0), (0, 0), (0, Tp - T)))

    # MaskedConv1d length arithmetic (new length is computed BEFORE masking).
    length = length.astype(jnp.int32)
    L1 = (length + 2 * P - D * (K - 1) - 1 + S) // S    # depthwise (and the 1x1 after it)
    Lr = (length - 1 + S) // S                          # residual 1x1, stride S, pad 0
    out_length = L1

    # Fold eval-mode BatchNorm into the 1x1 weights and a single bias, and fuse
    # the main + residual 1x1 convs into one (Cout, 2*Cin) matmul.
    def fold_bn(gamma, beta, mean, var, eps=1e-5):
        s = gamma / jnp.sqrt(var + eps)
        return s, beta - mean * s

    s_m, b_m = fold_bn(*params["bn_main"])
    w_cols = [s_m[:, None] * params["w_pw"]]
    bias = b_m
    if has_res:
        s_r, b_r = fold_bn(*params["bn_res"])
        w_cols.append(s_r[:, None] * params["w_res"])
        bias = bias + b_r
    w_fused = jnp.concatenate(w_cols, axis=1).astype(matmul_dtype)
    bias = bias.reshape(Cout, 1).astype(jnp.float32)
    w_dw = params["w_dw"].astype(jnp.float32)

    kern = functools.partial(
        _jasper_kernel, K=K, S=S, D=D, P=P, TT=TT, TWIN=TWIN,
        mm_dtype=matmul_dtype, has_res=has_res,
        roll_jnp=_roll_is_jnp_convention())

    out = pl.pallas_call(
        kern,
        out_shape=jax.ShapeDtypeStruct((B, Cout, nT * TT), jnp.float32),
        grid=(B, nT),
        in_specs=[
            pl.BlockSpec(memory_space=pltpu.MemorySpace.SMEM),            # L1
            pl.BlockSpec(memory_space=pltpu.MemorySpace.SMEM),            # Lr
            pl.BlockSpec((1, Cin, Tp), lambda b, t: (b, 0, 0)),           # x (resident per b)
            pl.BlockSpec((Cin, K), lambda b, t: (0, 0)),                  # depthwise weight
            pl.BlockSpec(w_fused.shape, lambda b, t: (0, 0)),             # fused 1x1 weight
            pl.BlockSpec((Cout, 1), lambda b, t: (0, 0)),                 # fused BN bias
        ],
        out_specs=pl.BlockSpec((1, Cout, TT), lambda b, t: (b, 0, t)),    # lane-dense tile
        compiler_params=pltpu.CompilerParams(
            dimension_semantics=("parallel", "parallel"),
            vmem_limit_bytes=48 * 1024 * 1024),
    )(L1, Lr, x, w_dw, w_fused, bias)

    # TODO(synk): for very long sequences, switch the resident per-batch slab to
    #             halo-tiled manual DMA so input VMEM is bounded independently of T.
    return out[:, :, :T_out], out_length


# --------------------------------------------------------------------------
# Pure-JAX reference mirroring the PyTorch forward (eval-mode BN / Dropout).
# --------------------------------------------------------------------------
def jasper_block_ref(x, length, params, *, kernel_size, stride=1, padding=0, dilation=1):
    B, Cin, T = x.shape
    K, S, P, D = kernel_size, stride, padding, dilation
    L0 = length.astype(jnp.int32)

    # depthwise MaskedConv1d
    L1 = (L0 + 2 * P - D * (K - 1) - 1 + S) // S
    xm = x * (jnp.arange(T)[None, :] < L1[:, None])[:, None, :]
    xpad = jnp.pad(xm, ((0, 0), (0, 0), (P, P)))
    T_out = (T + 2 * P - D * (K - 1) - 1) // S + 1
    dw = jnp.zeros((B, Cin, T_out), jnp.float32)
    for k in range(K):
        s0 = k * D
        win = lax.slice(xpad, (0, 0, s0), (B, Cin, s0 + (T_out - 1) * S + 1), (1, 1, S))
        dw = dw + params["w_dw"][None, :, k:k + 1] * win

    # 1x1 MaskedConv1d (stride 1, new length == L1) + BatchNorm (eval)
    dwm = dw * (jnp.arange(T_out)[None, :] < L1[:, None])[:, None, :]
    y = jnp.einsum("oc,bct->bot", params["w_pw"], dwm)
    g, b_, m, v = params["bn_main"]
    y = (y - m[None, :, None]) / jnp.sqrt(v[None, :, None] + 1e-5) * g[None, :, None] \
        + b_[None, :, None]

    if params.get("w_res") is not None:
        Lr = (L0 - 1 + S) // S
        xrm = x * (jnp.arange(T)[None, :] < Lr[:, None])[:, None, :]
        xrs = xrm[:, :, ::S][:, :, :T_out]
        r = jnp.einsum("oc,bct->bot", params["w_res"], xrs)
        g, b_, m, v = params["bn_res"]
        r = (r - m[None, :, None]) / jnp.sqrt(v[None, :, None] + 1e-5) * g[None, :, None] \
            + b_[None, :, None]
        y = y + r

    return jnp.maximum(y, 0.0), L1


# --------------------------------------------------------------------------
if __name__ == "__main__":
    B, Cin, Cout, T = 2, 16, 32, 200
    K, S, P, D = 3, 1, 1, 1          # "same" padding so the residual add is shape-valid

    key = jax.random.PRNGKey(0)
    k_x, k_dw, k_pw, k_res, k_bn1, k_bn2 = jax.random.split(key, 6)

    x = jax.random.normal(k_x, (B, Cin, T), jnp.float32)
    length = jnp.array([T, T - 63], dtype=jnp.int32)

    params = {
        "w_dw": jax.random.normal(k_dw, (Cin, K), jnp.float32) * 0.5,
        "w_pw": jax.random.normal(k_pw, (Cout, Cin), jnp.float32) / jnp.sqrt(Cin),
        "w_res": jax.random.normal(k_res, (Cout, Cin), jnp.float32) / jnp.sqrt(Cin),
        # BatchNorm (gamma, beta, running_mean, running_var), deterministic non-trivial
        "bn_main": (1.0 + 0.1 * jax.random.normal(k_bn1, (Cout,), jnp.float32),
                    0.1 * jax.random.normal(k_bn2, (Cout,), jnp.float32),
                    0.05 * jnp.arange(Cout, dtype=jnp.float32) / Cout,
                    0.5 + jnp.linspace(0.1, 1.0, Cout, dtype=jnp.float32)),
        "bn_res": (1.0 - 0.05 * jnp.linspace(0.0, 1.0, Cout, dtype=jnp.float32),
                   0.02 * jnp.arange(Cout, dtype=jnp.float32) / Cout,
                   -0.03 * jnp.ones((Cout,), jnp.float32),
                   0.8 * jnp.ones((Cout,), jnp.float32)),
    }

    ref_out, ref_len = jasper_block_ref(x, length, params, kernel_size=K,
                                        stride=S, padding=P, dilation=D)

    # f32 MXU path: tight structural check against the pure-JAX reference.
    out32, len32 = jasper_block(x, length, params, kernel_size=K, stride=S,
                                padding=P, dilation=D, matmul_dtype=jnp.float32)
    out32 = jax.block_until_ready(out32)
    assert out32.shape == ref_out.shape
    assert jnp.array_equal(len32, ref_len), "length mismatch vs reference"
    assert jnp.allclose(out32, ref_out, atol=2e-3, rtol=2e-3), "f32 mismatch vs reference"

    # bf16 MXU path (the fast default): looser tolerance vs the f32 reference.
    out16, len16 = jasper_block(x, length, params, kernel_size=K, stride=S,
                                padding=P, dilation=D, matmul_dtype=jnp.bfloat16)
    out16 = jax.block_until_ready(out16)
    assert jnp.array_equal(len16, ref_len), "length mismatch vs reference (bf16)"
    assert jnp.allclose(out16, ref_out, atol=1e-1, rtol=1e-1), "bf16 mismatch vs reference"

    # no-residual variant (module's residual=False).
    params_nores = dict(params, w_res=None, bn_res=None)
    out_nr, _ = jasper_block(x, length, params_nores, kernel_size=K, stride=S,
                             padding=P, dilation=D, matmul_dtype=jnp.float32)
    ref_nr, _ = jasper_block_ref(x, length, params_nores, kernel_size=K,
                                 stride=S, padding=P, dilation=D)
    out_nr = jax.block_until_ready(out_nr)
    assert jnp.allclose(out_nr, ref_nr, atol=2e-3, rtol=2e-3), "no-res mismatch vs reference"

    print("KERNEL_OK")
</pallas_src>

<mosaic_0001>
module attributes {stable_mosaic.version = 11 : i64} {
  func.func @probe(%arg0: memref<8x128xf32, #tpu.memory_space<vmem>>, %arg1: memref<8x128xf32, #tpu.memory_space<vmem>>) attributes {dimension_semantics = [], scalar_prefetch = 0 : i64, scratch_operands = 0 : i64, tpu.core_type = #tpu.core_type<tc>} {
    %c0 = arith.constant 0 : index
    %c0_0 = arith.constant 0 : index
    %0 = vector.load %arg0[%c0, %c0_0] : memref<8x128xf32, #tpu.memory_space<vmem>>, vector<8x128xf32>
    %c1_i32 = arith.constant 1 : i32
    %1 = tpu.dynamic_rotate %0 by %c1_i32 dim 1 : vector<8x128xf32>, i32 -> vector<8x128xf32>
    %c0_1 = arith.constant 0 : index
    %c0_2 = arith.constant 0 : index
    %2 = vector.load %arg1[%c0_1, %c0_2] : memref<8x128xf32, #tpu.memory_space<vmem>>, vector<8x128xf32>
    tpu.vector_store %arg1[%c0_1, %c0_2], %1 {strides = array<i32>} : memref<8x128xf32, #tpu.memory_space<vmem>>, vector<8x128xf32>,
    return
  }
}

</mosaic_0001>

<bundles_post_ra>
// kernel: tpu_custom_call.1
= control target key start
LH: loop header
LB: loop body
LE: loop exit
PB: predicated region body
PF: predicated region fallthrough
CT: control target
= control target key end

     0   :  { %6 = vsyncpa [#allocation3], 0  ;;  %s128_s0 = inlined_call_operand.hbm [shape: f32[8,128], index: 0, kind: input, shape index: {}]   ;;  %s129_s1 = inlined_call_operand.hbm [shape: f32[8,128], index: 1, kind: output, shape index: {}]  }
   0x1   :  { %7 = vsyncpa [#allocation4], 0  ;;  %s91_s6 = smov [#allocation2]   ;;  %s43_s10 = scalar_lea.hbm %s128_s0, 128 }
   0x2   :  { %s14_s7 = sshll.u32 %s91_s6, 4  ;;  %p44_p0 = scmp.ne.s32.totalorder %s128_s0, %s43_s10  ;;  %s15_s7 = int_to_ptr.vmem [resolvable:$true] %s14_s7 }
   0x3   :  { %p47_p1 = scmp.lt.u32.totalorder %s43_s10, %s128_s0 }
   0x5   :  { %p49_p2 = pnand %p47_p1, %p44_p0 }
   0x7   :  { %52 = shalt.err (!%p49_p2)
}
   0x8   :  { %s53_s15 = scalar_lea.vmem %s15_s7, 128  ;;  %p58_p4 = scmp.lt.s32.totalorder %s15_s7, %s15_s7 }
   0x9   :  { %p54_p3 = scmp.ne.s32.totalorder %s15_s7, %s53_s15  ;;  %p59_p5 = scmp.lt.s32.totalorder %s53_s15, %s53_s15 }
   0xb   :  { %p60_p6 = por %p59_p5, %p58_p4 }
   0xd   :  { %p61_p7 = pnand %p60_p6, %p54_p3 }
   0xf   :  { %64 = shalt.err (!%p61_p7)
}
  0x10   :  { %17 = dma.hbm_to_vmem [thread:$0]  %s128_s0, 128, %s15_s7, [#allocation3]  }
  0x11   :  { %87 = dma.done.wait [#allocation3], 128  }
  0x12   :  { %88 = vsyncadd [#allocation3], 4294967168  ;;  %v21_v0 = vld [vmem:[#allocation2] sm:$0xff]  ;;  %s92_s18 = smov 1   ;;  %s93_s19 = smov [#allocation5]  }
  0x13   :  { %22 = vrot.lane.b32.xlu0 %v21_v0, %s92_s18  ;;  %s31_s20 = sshll.u32 %s93_s19, 4  ;;  %s32_s20 = int_to_ptr.vmem [resolvable:$true] %s31_s20 }
  0x14   :  { %s65_s21 = scalar_lea.vmem %s32_s20, 128  ;;  %p70_p9 = scmp.lt.s32.totalorder %s32_s20, %s32_s20 }
  0x15   :  { %p66_p8 = scmp.ne.s32.totalorder %s32_s20, %s65_s21  ;;  %p71_p10 = scmp.lt.s32.totalorder %s65_s21, %s65_s21 }
  0x17   :  { %p72_p11 = por %p71_p10, %p70_p9 }
  0x19   :  { %p73_p12 = pnand %p72_p11, %p66_p8 }
  0x85   :  { %v23_v1 = vpop.permute.xlu0 %22 }
  0x86   :  { %24 = vst [vmem:[#allocation5] sm:$0xff] %v23_v1 }
  0x87   :  { %76 = shalt.err (!%p73_p12)
}
  0x88   :  { %s77_s0 = scalar_lea.hbm %s129_s1, 128 }
  0x89   :  { %p78_p13 = scmp.ne.s32.totalorder %s129_s1, %s77_s0  ;;  %p81_p0 = scmp.lt.u32.totalorder %s77_s0, %s129_s1 }
  0x8b   :  { %p83_p1 = pnand %p81_p0, %p78_p13 }
  0x8d   :  { %86 = shalt.err (!%p83_p1)
}
  0x8e   :  { %34 = dma.vmem_to_hbm [thread:$0]  %s32_s20, 128, %s129_s1, [#allocation4]  }
  0x8f   :  { %89 = dma.done.wait [#allocation4], 128  }
  0x90   :  { %90 = vsyncadd [#allocation4], 4294967168 }
  0x91   :  { %38 = vsyncpa [#allocation3], 1 }
  0x92   :  { %39 = vsyncpa [#allocation4], 1 }

</bundles_post_ra>
